<compile_context>
chip_gen: v6e
topology: v6e:2x2x1
jax: 0.10.0
libtpu: 0.0.40
codegen_flags: <defaults>
</compile_context>

<pallas_src>
import functools

import jax
import jax.numpy as jnp
from jax.experimental import pallas as pl
from jax.experimental.pallas import tpu as pltpu


_MAX_UNROLL_SLICES = 16  # chunks up to 16 x 128 lanes use the unrolled VPU path


def _global_avg_pool_kernel(x_ref, o_ref, acc_ref, *, inv_hw, hw, hw_chunk, unrolled):
    # x_ref:   (tile_rows, hw_chunk) input tile in VMEM
    # o_ref:   (tile_rows, 1) output tile (resident across the reduction axis)
    # acc_ref: f32 accumulator scratch, (tile_rows, 128) if unrolled else (tile_rows, 1)
    k = pl.program_id(1)
    nk = pl.num_programs(1)

    @pl.when(k == 0)
    def _init():
        acc_ref[...] = jnp.zeros_like(acc_ref)

    x = x_ref[...]

    # Mask lanes past the valid width on the (partial) last reduction step.
    # Pallas pads partial blocks with undefined data; for k < last the compare
    # is all-true, so applying it unconditionally is correct.
    if hw % hw_chunk != 0:
        lane = jax.lax.broadcasted_iota(jnp.int32, x.shape, dimension=1)
        valid = lane < (hw - k * hw_chunk)
        x = jnp.where(valid, x, jnp.zeros_like(x))

    if unrolled:
        # Deferred cross-lane reduce: accumulate 128-lane slices with pure VPU
        # adds (dtype widening fused per slice); one XLU reduce at finalize.
        acc = acc_ref[...]
        for j in range(hw_chunk // 128):
            acc = acc + x[:, j * 128:(j + 1) * 128].astype(jnp.float32)
        acc_ref[...] = acc
    else:
        # Large chunks (or tiny non-128 H*W): per-step reduce hides under DMA.
        # dtype= keeps bf16/low-precision widening fused into the reduction
        # instead of materializing an f32 copy of the whole tile.
        acc_ref[...] += jnp.sum(x, axis=-1, keepdims=True, dtype=jnp.float32)

    @pl.when(k == nk - 1)
    def _finalize():
        total = jnp.sum(acc_ref[...], axis=-1, keepdims=True)
        o_ref[...] = (total * inv_hw).astype(o_ref.dtype)


def _round_up(x, m):
    return ((x + m - 1) // m) * m


def _target_step_bytes():
    """Generation-aware per-input-buffer DMA step size.

    v6e/v7x: ~8 MiB steps keep the fixed ~0.35 us/step overhead small relative
    to their high HBM bandwidth; 2x8 MiB double-buffered still fits the 32 MiB
    default scoped VMEM (and leaves headroom on v7x's 64 MiB physical VMEM).
    v5e / older / unknown: keep 4 MiB so 2x buffers fit the 16 MiB default.
    """
    try:
        kind = jax.devices()[0].device_kind.lower()
    except Exception:
        kind = ""
    if "v6" in kind or "v7" in kind or "7x" in kind:
        return 8 * 1024 * 1024
    return 4 * 1024 * 1024


def _choose_tiles(rows, hw, dtype, target_bytes):
    """Jointly size (tile_rows, hw_chunk) to hit ~target_bytes per input tile."""
    itemsize = jnp.dtype(dtype).itemsize
    # Sublane multiple for packed dtypes: 8 (f32) / 16 (bf16) / 32 (int8).
    sublane = {4: 8, 2: 16, 1: 32}.get(itemsize, 8)
    rows_padded = _round_up(rows, sublane)

    # Lane (H*W) chunk: full extent when tiny, otherwise the largest
    # 128-aligned chunk that keeps even a minimum-height tile within budget.
    if hw <= 128:
        hw_chunk = hw
    else:
        max_lanes = max(128, (target_bytes // (sublane * itemsize)) // 128 * 128)
        hw_chunk = min((hw // 128) * 128, max_lanes)

    # Row tile: fill the remaining budget.
    tile_rows = target_bytes // (hw_chunk * itemsize)
    tile_rows = max(sublane, (tile_rows // sublane) * sublane)
    tile_rows = min(tile_rows, rows_padded)

    # Guarantee >=2 blocks on the parallel row axis when rows allow it, so
    # both v7x TensorCores get work (megacore sharding via "parallel").
    if rows_padded >= 2 * sublane:
        tile_rows = min(tile_rows, _round_up(pl.cdiv(rows, 2), sublane))

    return tile_rows, hw_chunk


def global_avg_pool2d(x):
    """Equivalent of F.avg_pool2d(x, kernel_size=x.shape[2:]) for NCHW input."""
    if not jnp.issubdtype(x.dtype, jnp.floating):
        raise TypeError(f"global_avg_pool2d expects a floating dtype, got {x.dtype}")

    n, c, h, w = x.shape
    rows = n * c
    hw = h * w
    x2d = x.reshape(rows, hw)

    target_bytes = _target_step_bytes()
    tile_rows, hw_chunk = _choose_tiles(rows, hw, x.dtype, target_bytes)
    grid = (pl.cdiv(rows, tile_rows), pl.cdiv(hw, hw_chunk))

    unrolled = (hw_chunk % 128 == 0) and (hw_chunk // 128 <= _MAX_UNROLL_SLICES)
    acc_shape = (tile_rows, 128) if unrolled else (tile_rows, 1)

    kernel = functools.partial(
        _global_avg_pool_kernel,
        inv_hw=1.0 / float(hw),
        hw=hw,
        hw_chunk=hw_chunk,
        unrolled=unrolled,
    )

    itemsize = jnp.dtype(x.dtype).itemsize
    cost = pl.CostEstimate(
        flops=rows * hw + rows,
        transcendentals=0,
        bytes_accessed=rows * hw * itemsize + rows * itemsize,
    )

    out2d = pl.pallas_call(
        kernel,
        out_shape=jax.ShapeDtypeStruct((rows, 1), x.dtype),
        grid_spec=pltpu.PrefetchScalarGridSpec(
            num_scalar_prefetch=0,
            grid=grid,
            in_specs=[pl.BlockSpec((tile_rows, hw_chunk), lambda i, k: (i, k))],
            out_specs=pl.BlockSpec((tile_rows, 1), lambda i, k: (i, 0)),
            scratch_shapes=[pltpu.VMEM(acc_shape, jnp.float32)],
        ),
        compiler_params=pltpu.CompilerParams(
            # Row tiles are independent -> parallel (megacore on v7x);
            # H*W reduction axis is last and arbitrary (output-resident acc).
            dimension_semantics=("parallel", "arbitrary"),
        ),
        cost_estimate=cost,
    )(x2d)

    return out2d.reshape(n, c, 1, 1)


if __name__ == "__main__":
    key = jax.random.PRNGKey(0)
    k1, k2, k3 = jax.random.split(key, 3)

    # Primary small test (batch=2, channels=4, spatial=16x16): hw=256,
    # 128-divisible -> unrolled VPU accumulate path, no masking.
    x = jax.random.normal(k1, (2, 4, 16, 16), dtype=jnp.float32)
    out = global_avg_pool2d(x)
    jax.block_until_ready(out)
    ref = jnp.mean(x, axis=(2, 3), keepdims=True)
    assert out.shape == (2, 4, 1, 1), out.shape
    assert jnp.allclose(out, ref, atol=1e-6, rtol=1e-6)

    # hw=49 < 128 -> full-extent single-step reduction path.
    x2 = jax.random.normal(k2, (2, 4, 7, 7), dtype=jnp.float32)
    out2 = global_avg_pool2d(x2)
    jax.block_until_ready(out2)
    ref2 = jnp.mean(x2, axis=(2, 3), keepdims=True)
    assert out2.shape == (2, 4, 1, 1), out2.shape
    assert jnp.allclose(out2, ref2, atol=1e-6, rtol=1e-6)

    # hw=196 (14x14): 128-aligned chunk + masked remainder on the last step.
    x3 = jax.random.normal(k3, (2, 4, 14, 14), dtype=jnp.float32)
    out3 = global_avg_pool2d(x3)
    jax.block_until_ready(out3)
    ref3 = jnp.mean(x3, axis=(2, 3), keepdims=True)
    assert out3.shape == (2, 4, 1, 1), out3.shape
    assert jnp.allclose(out3, ref3, atol=1e-6, rtol=1e-6)

    print("KERNEL_OK")
</pallas_src>

<mosaic_0001>
module attributes {stable_mosaic.version = 11 : i64} {
  func.func @_global_avg_pool_kernel(%arg0: i32, %arg1: i32, %arg2: memref<8x256xf32, #tpu.memory_space<vmem>>, %arg3: memref<8x1xf32, #tpu.memory_space<vmem>>, %arg4: memref<8x128xf32, #tpu.memory_space<vmem>>) attributes {dimension_semantics = [#tpu.dimension_semantics<parallel>, #tpu.dimension_semantics<arbitrary>], iteration_bounds = array<i64: 1, 1>, scalar_prefetch = 0 : i64, scratch_operands = 1 : i64, tpu.core_type = #tpu.core_type<tc>, window_params = [{transform_indices = @transform_0, window_bounds = array<i64: 8, 256>}, {transform_indices = @transform_1, window_bounds = array<i64: 8, 1>}]} {
    %c0_i32 = arith.constant 0 : i32
    %0 = arith.cmpi eq, %arg1, %c0_i32 : i32
    %1 = arith.extui %0 : i1 to i32
    %c0_i32_0 = arith.constant 0 : i32
    %2 = arith.cmpi ne, %1, %c0_i32_0 : i32
    scf.if %2 {
      %cst = arith.constant 0.000000e+00 : f32
      %13 = vector.broadcast %cst : f32 to vector<8x128xf32>
      %c0_8 = arith.constant 0 : index
      %c0_9 = arith.constant 0 : index
      %14 = vector.load %arg4[%c0_8, %c0_9] : memref<8x128xf32, #tpu.memory_space<vmem>>, vector<8x128xf32>
      tpu.vector_store %arg4[%c0_8, %c0_9], %13 {strides = array<i32>} : memref<8x128xf32, #tpu.memory_space<vmem>>, vector<8x128xf32>,
    } else {
    }
    %c0 = arith.constant 0 : index
    %c0_1 = arith.constant 0 : index
    %3 = vector.load %arg2[%c0, %c0_1] : memref<8x256xf32, #tpu.memory_space<vmem>>, vector<8x256xf32>
    %c0_2 = arith.constant 0 : index
    %c0_3 = arith.constant 0 : index
    %4 = vector.load %arg4[%c0_2, %c0_3] : memref<8x128xf32, #tpu.memory_space<vmem>>, vector<8x128xf32>
    %5 = vector.extract_strided_slice %3 {offsets = [0, 0], sizes = [8, 128], strides = [1, 1]} : vector<8x256xf32> to vector<8x128xf32>
    %6 = arith.addf %4, %5 : vector<8x128xf32>
    %7 = vector.extract_strided_slice %3 {offsets = [0, 128], sizes = [8, 128], strides = [1, 1]} : vector<8x256xf32> to vector<8x128xf32>
    %8 = arith.addf %6, %7 : vector<8x128xf32>
    %c0_4 = arith.constant 0 : index
    %c0_5 = arith.constant 0 : index
    %9 = vector.load %arg4[%c0_4, %c0_5] : memref<8x128xf32, #tpu.memory_space<vmem>>, vector<8x128xf32>
    tpu.vector_store %arg4[%c0_4, %c0_5], %8 {strides = array<i32>} : memref<8x128xf32, #tpu.memory_space<vmem>>, vector<8x128xf32>,
    %c0_i32_6 = arith.constant 0 : i32
    %10 = arith.cmpi eq, %arg1, %c0_i32_6 : i32
    %11 = arith.extui %10 : i1 to i32
    %c0_i32_7 = arith.constant 0 : i32
    %12 = arith.cmpi ne, %11, %c0_i32_7 : i32
    scf.if %12 {
      %c0_8 = arith.constant 0 : index
      %c0_9 = arith.constant 0 : index
      %13 = vector.load %arg4[%c0_8, %c0_9] : memref<8x128xf32, #tpu.memory_space<vmem>>, vector<8x128xf32>
      %cst = arith.constant dense<0.000000e+00> : vector<8xf32>
      %14 = vector.multi_reduction <add>, %13, %cst [1] : vector<8x128xf32> to vector<8xf32>
      %15 = vector.shape_cast %14 : vector<8xf32> to vector<8x1xf32>
      %cst_10 = arith.constant 3.906250e-03 : f32
      %16 = vector.broadcast %cst_10 : f32 to vector<8x1xf32>
      %17 = arith.mulf %15, %16 : vector<8x1xf32>
      %c0_11 = arith.constant 0 : index
      %c0_12 = arith.constant 0 : index
      %18 = vector.load %arg3[%c0_11, %c0_12] : memref<8x1xf32, #tpu.memory_space<vmem>>, vector<8x1xf32>
      tpu.vector_store %arg3[%c0_11, %c0_12], %17 {strides = array<i32>} : memref<8x1xf32, #tpu.memory_space<vmem>>, vector<8x1xf32>,
    } else {
    }
    return
  }
  func.func @transform_0(%arg0: i32, %arg1: i32) -> (i32, i32) {
    %c0_i32 = arith.constant 0 : i32
    return %arg0, %arg1 : i32, i32
  }
  func.func @transform_1(%arg0: i32, %arg1: i32) -> (i32, i32) {
    %c0_i32 = arith.constant 0 : i32
    %c0_i32_0 = arith.constant 0 : i32
    return %arg0, %c0_i32 : i32, i32
  }
}

</mosaic_0001>

<bundles_post_ra>
// kernel: tpu_custom_call.1
= control target key start
LH: loop header
LB: loop body
LE: loop exit
PB: predicated region body
PF: predicated region fallthrough
CT: control target
= control target key end

     0   :  { %6 = vsyncpa [#allocation4], 0  ;;  %s68_s6 = smov [#allocation3]   ;;  %s85_s0 = inlined_call_operand.hbm [shape: f32[8,256], index: 0, kind: input, shape index: {}]   ;;  %s86_s1 = inlined_call_operand.vmem [shape: f32[8,1], index: 1, kind: output, shape index: {}]  }
   0x1   :  { %s13_s7 = sshll.u32 %s68_s6, 4  ;;  %s14_s7 = int_to_ptr.vmem [resolvable:$true] %s13_s7 }
   0x2   :  { %s54_s8 = scalar_lea.vmem %s14_s7, 256  ;;  %p59_p1 = scmp.lt.s32.totalorder %s14_s7, %s14_s7 }
   0x3   :  { %p55_p0 = scmp.ne.s32.totalorder %s14_s7, %s54_s8  ;;  %p60_p2 = scmp.lt.s32.totalorder %s54_s8, %s54_s8 }
   0x5   :  { %p61_p3 = por %p60_p2, %p59_p1 }
   0x7   :  { %p62_p4 = pnand %p61_p3, %p55_p0 }
   0x9   :  { %65 = shalt.err (!%p62_p4)
}
   0xa   :  { %16 = dma.hbm_to_vmem [thread:$0]  %s85_s0, 256, %s14_s7, [#allocation4]  }
   0xb   :  { %66 = dma.done.wait [#allocation4], 256  }
   0xc   :  { %67 = vsyncadd [#allocation4], 4294967040  ;;  %v25_v0 = vld [vmem:[#allocation3] sm:$0xff]  ;;  %v26_v1 = vld [vmem:[#allocation3 + $0x8] sm:$0xff]  ;;  %vm38_vm0 = vcmask 7168  }
   0xd   :  { %v29_v2 = vadd.f32 %v26_v1, %v25_v0 }
   0xf   :  { %35 = vadd.xlane.f32.xlu0 %v29_v2 }
  0x98   :  { %v36_v3 = vpop.xlane.xlu0 %35 }
  0x99   :  { %v37_v4 = vmul.f32 0.00390625, %v36_v3 }
  0x9b   :  { %39 = vst.msk [vmem:[%s86_s1] sm:$0xff] %vm38_vm0, %v37_v4 }
  0x9c   :  { %44 = vsyncpa [#allocation4], 1 }

</bundles_post_ra>
